<compile_context>
chip_gen: v5e
topology: v5e:2x2
jax: 0.10.0
libtpu: 0.0.40
codegen_flags: <defaults>
</compile_context>

<pallas_src>
import jax
import jax.numpy as jnp
from jax.experimental import pallas as pl
from jax.experimental.pallas import tpu as pltpu


LANES = 128
TARGET_BLOCK_BYTES = 4 * 1024 * 1024   # ~4 MiB per block -> ~16 MiB VMEM w/ double-buffered in+out
VMEM_LIMIT_BYTES = 32 * 1024 * 1024    # lift v5e's 16 MiB default scoped-VMEM limit


def _round_up(a, b):
    return -(-a // b) * b


def _softshrink_kernel(t_ref, x_ref, o_ref):
    # t_ref: (1, 1) f32 scalar threshold in SMEM.
    # x_ref / o_ref: (row_tile, LANES) tiles in VMEM, same dtype as the input.
    x = x_ref[...]
    t = t_ref[0, 0].astype(x.dtype)        # scalar cast; a no-op for f32 inputs
    # SoftShrink: sign(x) * max(|x| - t, 0) == x - clip(x, -t, t)
    o_ref[...] = x - jnp.clip(x, -t, t)


def _softshrink_slab(slab, t_arr):
    """Run the kernel over a lane-dense (rows, 128) slab."""
    rows, lanes = slab.shape
    dtype = slab.dtype
    itemsize = jnp.dtype(dtype).itemsize

    # Sublane granularity from dtype packing (8 for f32, 16 for bf16, 32 for int8/fp8).
    packing = max(1, 4 // itemsize)
    sub = 8 * packing

    # Byte-targeted row tile: same per-step DMA size for every dtype ...
    target_rows = max(sub, (TARGET_BLOCK_BYTES // (lanes * itemsize)) // sub * sub)
    # ... capped to the slab, and to half of it so a 2-TC chip (v7x megacore)
    # always gets at least 2 grid steps to split across cores.
    half_rows = max(sub, _round_up(pl.cdiv(rows, 2), sub))
    row_tile = min(target_rows, _round_up(rows, sub), half_rows)
    grid = (pl.cdiv(rows, row_tile),)

    total = rows * lanes
    cost = pl.CostEstimate(
        flops=3 * total,
        transcendentals=0,
        bytes_accessed=2 * total * itemsize,
    )

    return pl.pallas_call(
        _softshrink_kernel,
        out_shape=jax.ShapeDtypeStruct((rows, lanes), dtype),
        grid_spec=pltpu.PrefetchScalarGridSpec(
            num_scalar_prefetch=0,
            grid=grid,
            in_specs=[
                pl.BlockSpec(memory_space=pltpu.SMEM),               # t (scalar, untiled)
                pl.BlockSpec((row_tile, lanes), lambda i: (i, 0)),   # x
            ],
            out_specs=pl.BlockSpec((row_tile, lanes), lambda i: (i, 0)),
        ),
        compiler_params=pltpu.CompilerParams(
            dimension_semantics=("parallel",),
            vmem_limit_bytes=VMEM_LIMIT_BYTES,
        ),
        cost_estimate=cost,
    )(t_arr, slab)


def softshrink(x, t):
    """Applies soft thresholding elementwise. x: any (floating) shape, t: scalar >= 0."""
    orig_shape = x.shape
    dtype = x.dtype
    total = x.size

    t_arr = jnp.asarray(t, dtype=jnp.float32).reshape(1, 1)

    if total % LANES == 0:
        # Pure reshape of a contiguous array -> no HBM copy.
        out = _softshrink_slab(x.reshape(total // LANES, LANES), t_arr)
        return out.reshape(orig_shape)

    # Rare misaligned fallback: kernel on the lane-aligned prefix (zero-copy
    # reshape) + plain-jnp tail (< 128 elements).  Avoids a full-size jnp.pad.
    flat = x.reshape(-1)
    prefix = (total // LANES) * LANES
    t_x = jnp.asarray(t, dtype=jnp.float32).astype(dtype)
    tail_in = flat[prefix:]
    tail_out = tail_in - jnp.clip(tail_in, -t_x, t_x)
    if prefix:
        head_out = _softshrink_slab(
            flat[:prefix].reshape(prefix // LANES, LANES), t_arr
        ).reshape(-1)
        out = jnp.concatenate([head_out, tail_out])
    else:
        out = tail_out
    return out.reshape(orig_shape)


def softshrink_ref(x, t):
    """Pure-JAX reference mirroring the PyTorch forward."""
    xf = x.astype(jnp.float32)
    y = jnp.sign(xf) * jnp.maximum(jnp.abs(xf) - jnp.float32(t), 0.0)
    return y.astype(x.dtype)


# TODO(synk): backward pass (SoftShrinkCUDA1.backward producing dx, dt) is not
# implemented; only the module's forward semantics are translated.

if __name__ == "__main__":
    key = jax.random.PRNGKey(0)
    # NCHW input, small shapes
    x = jax.random.normal(key, (2, 4, 16, 16), dtype=jnp.float32)

    # Deterministic parameter init, matching SoftShrinkCUDA(t=1.0)
    t_init = jnp.float32(1.0)

    y = softshrink(x, t_init)
    y = jax.block_until_ready(y)

    y_ref = softshrink_ref(x, t_init)
    assert y.shape == x.shape and y.dtype == x.dtype
    assert jnp.allclose(y, y_ref, atol=1e-6, rtol=1e-6)

    print("KERNEL_OK")
</pallas_src>

<mosaic_0001>
module attributes {stable_mosaic.version = 11 : i64} {
  func.func @_softshrink_kernel(%arg0: i32, %arg1: memref<1x1xf32, #tpu.memory_space<smem>>, %arg2: memref<8x128xf32, #tpu.memory_space<vmem>>, %arg3: memref<8x128xf32, #tpu.memory_space<vmem>>) attributes {dimension_semantics = [#tpu.dimension_semantics<parallel>], iteration_bounds = array<i64: 2>, scalar_prefetch = 0 : i64, scratch_operands = 0 : i64, tpu.core_type = #tpu.core_type<tc>, window_params = [{transform_indices = @transform_0, window_bounds = array<i64: 1, 1>}, {transform_indices = @transform_1, window_bounds = array<i64: 8, 128>}, {transform_indices = @transform_2, window_bounds = array<i64: 8, 128>}]} {
    %c0 = arith.constant 0 : index
    %c0_0 = arith.constant 0 : index
    %0 = vector.load %arg2[%c0, %c0_0] : memref<8x128xf32, #tpu.memory_space<vmem>>, vector<8x128xf32>
    %c0_1 = arith.constant 0 : index
    %c0_2 = arith.constant 0 : index
    %1 = memref.load %arg1[%c0_1, %c0_2] : memref<1x1xf32, #tpu.memory_space<smem>>
    %cst = arith.constant 0.000000e+00 : f32
    %2 = arith.subf %cst, %1 : f32
    %3 = vector.broadcast %2 : f32 to vector<8x128xf32>
    %4 = arith.maximumf %3, %0 : vector<8x128xf32>
    %5 = vector.broadcast %1 : f32 to vector<8x128xf32>
    %6 = arith.minimumf %5, %4 : vector<8x128xf32>
    %7 = arith.subf %0, %6 : vector<8x128xf32>
    %c0_3 = arith.constant 0 : index
    %c0_4 = arith.constant 0 : index
    %8 = vector.load %arg3[%c0_3, %c0_4] : memref<8x128xf32, #tpu.memory_space<vmem>>, vector<8x128xf32>
    tpu.vector_store %arg3[%c0_3, %c0_4], %7 {strides = array<i32>} : memref<8x128xf32, #tpu.memory_space<vmem>>, vector<8x128xf32>,
    return
  }
  func.func @transform_0(%arg0: i32) -> (i32, i32) {
    %c0_i32 = arith.constant 0 : i32
    %c0_i32_0 = arith.constant 0 : i32
    %c0_i32_1 = arith.constant 0 : i32
    return %c0_i32, %c0_i32_0 : i32, i32
  }
  func.func @transform_1(%arg0: i32) -> (i32, i32) {
    %c0_i32 = arith.constant 0 : i32
    %c0_i32_0 = arith.constant 0 : i32
    return %arg0, %c0_i32 : i32, i32
  }
  func.func @transform_2(%arg0: i32) -> (i32, i32) {
    %c0_i32 = arith.constant 0 : i32
    %c0_i32_0 = arith.constant 0 : i32
    return %arg0, %c0_i32 : i32, i32
  }
}

</mosaic_0001>

<bundles_post_ra>
// kernel: tpu_custom_call.1
= control target key start
LH: loop header
LB: loop body
LE: loop exit
PB: predicated region body
PF: predicated region fallthrough
CT: control target
= control target key end

     0   :  { %s558_s0 = inlined_call_operand.<no memory space> [shape: f32[1,1], index: 0, kind: input, shape index: {}]   ;;  %s559_s1 = inlined_call_operand.hbm [shape: f32[16,128], index: 1, kind: input, shape index: {}]   ;;  %s560_s2 = inlined_call_operand.hbm [shape: f32[16,128], index: 2, kind: output, shape index: {}]  }
   0x1   :  { %7 = sst [smem:[#allocation2]] %s558_s0 }
   0x2   :  { %8 = vsyncpa [#allocation4], 0 }
   0x3   :  { %10 = vsyncpa [#allocation4 + $0x1], 0 }
   0x4   :  { %11 = vsyncpa [#allocation5], 0 }
   0x5   :  { %13 = vsyncpa [#allocation5 + $0x1], 0  ;;  %s431_s11 = smov 0   ;;  %s433_s12 = smov 0  }
   0x6   :  { %s435_s13 = smov 0   ;;  %s437_s14 = smov 0  }
   0x7 LB: > { %s452_s0 = sadd.s32 4294967295, %s411_s14   ;;  %s257_s15 = sadd.s32 4294967294, %s411_s14   ;;  %s411_s14 = sphi %s437_s14, %s570_s14   ;;  %s407_s13 = sphi %s435_s13, %s569_s13   ;;  %s403_s12 = sphi %s433_s12, %s568_s12   ;;  %s399_s11 = sphi %s431_s11, %s567_s11  }
   0x8   : > { %s456_s16 = sadd.s32 1, %s411_s14   ;;  %s47_s17 = sadd.s32 1, %s407_s13 }
   0x9   : > { %s44_s18 = ssub.s32 %s411_s14, %s456_s16  ;;  %p54_p0 = scmp.ne.s32.totalorder %s407_s13, %s403_s12 }
   0xa   : > { %p45_p1 = scmp.eq.s32.totalorder %s44_s18, 0  ;;  %p55_p2 = scmp.eq.s32.totalorder %s411_s14, 0 }
   0xb   : > { %p60_p3 = scmp.ne.s32.totalorder %s403_s12, %s399_s11  ;;  %p61_p4 = scmp.eq.s32.totalorder %s452_s0, 0 }
   0xc   : > { %s468_s19 = scalar_select %p45_p1, %s407_s13, %s47_s17  }
   0xd   : > { %p470_p5 = por %p55_p2, %p54_p0  ;;  %p474_p6 = por %p61_p4, %p60_p3 }
   0xe   : > { %p84_p7 = scmp.eq.s32.totalorder %s452_s0, 1  ;;  %p90_p8 = scmp.eq.s32.totalorder %s257_s15, 1 }
   0xf   : > { %p281_p10 = scmp.lt.s32.totalorder %s411_s14, 2  ;;  %s113_s24 = sand.u32 1, %s407_s13  }
  0x10   : > { %p481_p11 = por %p84_p7, %p54_p0  ;;  %p485_p12 = por %p90_p8, %p60_p3 }
  0x11   : > { %s261_s25 = sshll.u32 %s411_s14, 3  ;;  %s260_s26 = sshll.u32 %s113_s24, 3 }
  0x12   : > { %s121_s29 = scalar_lea.hbm %s559_s1, %s261_s25  ;;  %s117_s3 = scalar_lea.vmem [#allocation3], %s260_s26 }
  0x13   : > { %s123_s30 = sshll.u32 %s121_s29, 4  ;;  %s125_s4 = sshll.u32 %s117_s3, 4  ;;  %s124_s30 = int_to_ptr.hbm [resolvable:$true] %s123_s30  ;;  %s126_s4 = int_to_ptr.vmem [resolvable:$true] %s125_s4 }
  0x14   : > { %p496_p13 = pnand %p281_p10, %p470_p5  ;;  %p262_p0 = scmp.ge.s32.totalorder %s411_s14, 1 }
  0x15   : > { %p130_p1 = scmp.lt.s32.totalorder %s411_s14, 3  ;;  %s114_s6 = scalar_lea.sflag [#allocation4], %s113_s24 }
  0x16   : > { %s315_s7 = sshra.s32 %s124_s30, 4  ;;  %p319_p3 = pneg %p496_p13  ;;  %s316_s7 = int_to_ptr.hbm [resolvable:$true] %s315_s7 }
  0x17   : > { %s317_s8 = scalar_lea.hbm %s316_s7, 8  ;;  %s322_s15 = scalar_lea.hbm %s559_s1, 16 }
  0x18   : > { %p318_p2 = scmp.ne.s32.totalorder %s316_s7, %s317_s8  ;;  %p323_p5 = scmp.lt.s32.totalorder %s316_s7, %s559_s1 }
  0x19   : > { %p324_p8 = scmp.lt.s32.totalorder %s322_s15, %s317_s8 }
  0x1a   : > { %p320_p4 = pnand %p319_p3, %p318_p2 }
  0x1b   : > { %p325_p10 = por %p324_p8, %p323_p5 }
  0x1c   : > { %p321_p7 = pneg %p320_p4 }
  0x1e   : > { %p326_p9 = pnand %p325_p10, %p321_p7 }
  0x20   : > { %329 = shalt.err (!%p326_p9)
}
  0x21   : > { %276 = dma.hbm_to_vmem [thread:$0]  (!%p496_p13), %s124_s30, 128, %s126_s4, %s114_s6  }
  0x22   : > { %p131_p2 = pnand %p262_p0, %p130_p1 }
  0x23   : > { %s517_s20 = sand.u32 (!%p131_p2), 1, %s403_s12  }
  0x24   : > { %134 = sbr.rel (%p131_p2) target bundleno = 60 (0x3c), region = 28  ;;  %s263_s24 = sshll.u32 (!%p131_p2), %s517_s20, 3 }
  0x25   : > { %s137_s25 = scalar_lea.sflag (!%p131_p2), [#allocation4], %s517_s20  ;;  %s140_s26 = scalar_lea.vmem (!%p131_p2), [#allocation3], %s263_s24 }
  0x29   : > { %390 = dma.done.wait (%p474_p6), %s137_s25, 128  }
  0x2a   : > { %392 = vsyncadd (%p474_p6), %s137_s25, 4294967168  ;;  %s163_s27 = sld [smem:[#allocation2]]  ;;  %s266_s28 = sshll.u32 %s452_s0, 3  ;;  %v162_v0 = vld [vmem:[%s140_s26] sm:$0xff] }
  0x2b   : > { %s182_s4 = scalar_lea.hbm %s560_s2, %s266_s28  ;;  %s161_s5 = scalar_lea.vmem [#allocation6], %s263_s24 }
  0x2c   : > { %s184_s6 = sshll.u32 %s161_s5, 4  ;;  %s186_s7 = sshll.u32 %s182_s4, 4  ;;  %s185_s6 = int_to_ptr.vmem [resolvable:$true] %s184_s6  ;;  %s187_s7 = int_to_ptr.hbm [resolvable:$true] %s186_s7 }
  0x2d   : > { %s172_s21 = scalar_lea.sflag [#allocation5], %s517_s20  ;;  %s359_s0 = sshra.s32 %s187_s7, 4  ;;  %s360_s0 = int_to_ptr.hbm [resolvable:$true] %s359_s0 }
  0x2e   : > { %s361_s8 = scalar_lea.hbm %s360_s0, 8  ;;  %s365_s15 = scalar_lea.hbm %s560_s2, 16 }
  0x2f   : > { %p362_p6 = scmp.ne.s32.totalorder %s360_s0, %s361_s8  ;;  %p366_p0 = scmp.lt.s32.totalorder %s360_s0, %s560_s2 }
  0x30   : > { %s164_s29 = ssub.f32 0.0, %s163_s27  ;;  %v167_v2 = vstv %s163_s27  ;;  %p367_p1 = scmp.lt.s32.totalorder %s365_s15, %s361_s8 }
  0x31   : > { %p363_p9 = pnand %p362_p6, %p481_p11 }
  0x32   : > { %v165_v1 = vstv %s164_s29  ;;  %p368_p3 = por %p367_p1, %p366_p0 }
  0x33   : > { %v166_v3 = vmax.f32 %v165_v1, %v162_v0  ;;  %p364_p13 = pneg %p363_p9 }
  0x35   : > { %v168_v4 = vmin.f32 %v167_v2, %v166_v3  ;;  %p369_p4 = pnand %p368_p3, %p364_p13 }
  0x37   : > { %v169_v5 = vsub.f32 %v162_v0, %v168_v4 }
  0x39   : > { %170 = vst [vmem:[%s161_s5] sm:$0xff] %v169_v5 }
  0x3a   : > { %372 = shalt.err (!%p369_p4)
}
  0x3b   : > { %271 = dma.vmem_to_hbm [thread:$0]  (%p481_p11), %s185_s6, 128, %s187_s7, %s172_s21  }
  0x3c PF: > { %s198_s20 = sand.u32 1, %s399_s11   ;;  %p566_p7 = scmp.ge.s32.totalorder %s411_s14, 2 }
  0x3d   : > { %s199_s24 = scalar_lea.sflag [#allocation5], %s198_s20 }
  0x3e   : > { %p278_p5 = pnand %p566_p7, %p485_p12 }
  0x40   : > { %p279_p8 = pneg %p278_p5 }
  0x42   : > { %394 = dma.done.wait (%p279_p8), %s199_s24, 128  }
  0x43   : > { %396 = vsyncadd (%p279_p8), %s199_s24, 4294967168  ;;  %p16_p10 = scmp.ge.s32.totalorder %s456_s16, 4   ;;  %s567_s11 = smov %s403_s12 }
  0x44   : > { %s568_s12 = smov %s407_s13  ;;  %s569_s13 = smov %s468_s19 }
  0x45   : > { %s570_s14 = smov %s456_s16  ;;  %18 = sbr.rel (!%p16_p10) target bundleno = 7 (0x7), region = 73 }
  0x4a   :  { %205 = vsyncpa [#allocation4], 1 }
  0x4b   :  { %207 = vsyncpa [#allocation4 + $0x1], 1 }
  0x4c   :  { %208 = vsyncpa [#allocation5], 1 }
  0x4d   :  { %210 = vsyncpa [#allocation5 + $0x1], 1 }

</bundles_post_ra>
